<compile_context>
chip_gen: v7x
topology: tpu7x:2x2x1
jax: 0.10.0
libtpu: 0.0.40
codegen_flags: <defaults>
</compile_context>

<pallas_src>
import jax
import jax.numpy as jnp
from jax.experimental import pallas as pl
from jax.experimental.pallas import tpu as pltpu


# ---------------------------------------------------------------------------
# Kernel
# ---------------------------------------------------------------------------
def _make_linear_kernel(n_features, f_block):
    """GEMV over a (batch "parallel", feature "arbitrary") grid.

    x_ref:   (TB, TF) VMEM  activation tile
    w_ref:   (1, TF)  VMEM  weight row slice (PyTorch (out=1, in=F) layout)
    b_ref:   (1, 1)   SMEM  bias scalar (f32)
    o_ref:   (1, TB)  VMEM  lane-dense output row for this batch tile
    acc_ref: (1, TB)  f32 VMEM scratch — feature-axis accumulator
    """
    ragged = (n_features % f_block) != 0
    f_rem = n_features % f_block

    def kernel(x_ref, w_ref, b_ref, o_ref, acc_ref):
        k = pl.program_id(1)
        nk = pl.num_programs(1)

        @pl.when(k == 0)
        def _():
            acc_ref[...] = jnp.zeros_like(acc_ref)

        x = x_ref[...]
        w = w_ref[...]
        if ragged:
            # Last feature block extends past n_features: those lanes hold
            # undefined data and must never enter the reduction.
            valid = jnp.where(k == nk - 1, f_rem, f_block)
            lane_x = jax.lax.broadcasted_iota(jnp.int32, x.shape, 1)
            lane_w = jax.lax.broadcasted_iota(jnp.int32, w.shape, 1)
            x = jnp.where(lane_x < valid, x, jnp.zeros_like(x))
            w = jnp.where(lane_w < valid, w, jnp.zeros_like(w))

        # (1, TF) x (TB, TF), contract TF -> (1, TB); f32 accumulation on MXU.
        acc_ref[...] += jax.lax.dot_general(
            w, x,
            dimension_numbers=(((1,), (1,)), ((), ())),
            preferred_element_type=jnp.float32,
        )

        @pl.when(k == nk - 1)
        def _():
            o_ref[...] = (acc_ref[...] + b_ref[0, 0]).astype(o_ref.dtype)

    return kernel


# ---------------------------------------------------------------------------
# Tiling / VMEM budgets
# ---------------------------------------------------------------------------
def _round_up(x, m):
    return ((x + m - 1) // m) * m


def _vmem_budgets():
    """(per-x-buffer budget bytes, vmem_limit_bytes), gated on chip generation."""
    phys = None
    try:
        if hasattr(pltpu, "get_tpu_info"):
            phys = int(getattr(pltpu.get_tpu_info(), "vmem_capacity_bytes", 0)) or None
    except Exception:
        phys = None
    if phys is None or phys <= 64 * 1024 * 1024:
        # v7x-class (64 MiB VMEM per TC) or unknown: stay conservative.
        return 4 * 1024 * 1024, 32 * 1024 * 1024
    # v5e / v6e: 128 MiB physical VMEM -> bigger blocks, fewer grid steps.
    return 8 * 1024 * 1024, 64 * 1024 * 1024


def _pick_tiles(batch, n_features, itemsize, per_buffer_budget):
    # Feature tile: keep all of F in one block unless even a 128-row block
    # would blow the per-buffer budget; then split F at <=4K lanes.
    if 128 * n_features * itemsize <= per_buffer_budget:
        tf = n_features
    else:
        tf = min(4096, _round_up(n_features, 128))
        tf = max(128, (tf // 128) * 128)

    # Batch tile: biggest 128-multiple whose (tb, tf) x-block fits the budget,
    # so each grid step moves multi-MiB (amortises ~0.35us/step overhead).
    tb = per_buffer_budget // max(1, tf * itemsize)
    tb = max(128, (tb // 128) * 128)
    tb = min(tb, _round_up(batch, 128))

    # v7x megacore: prefer >= 2 batch tiles when the batch allows it.
    if tb >= batch and batch > 128:
        tb = _round_up(-(-batch // 2), 128)
    return tb, tf


# ---------------------------------------------------------------------------
# Wrapper
# ---------------------------------------------------------------------------
def linear_net_forward(x, w, b, *, tb=None, tf=None):
    """LinearNet.forward: y = x @ w.T + b (PyTorch nn.Linear(n_features, 1))."""
    B, F = x.shape
    assert w.shape == (1, F)
    assert b.shape == (1,)

    if F < 128:
        # Lane-sparse on TPU (only F of 128 lanes used; DMA fragments into
        # tiny tile writes): a fused XLA op beats a Pallas launch here.
        return (jnp.dot(x, w.astype(x.dtype).T) + b.astype(x.dtype)).astype(x.dtype)

    w = w.astype(x.dtype)                         # matched MXU input dtypes
    bias_smem = b.astype(jnp.float32).reshape(1, 1)
    itemsize = jnp.dtype(x.dtype).itemsize

    per_buffer_budget, vmem_limit = _vmem_budgets()
    auto_tb, auto_tf = _pick_tiles(B, F, itemsize, per_buffer_budget)
    tb = auto_tb if tb is None else _round_up(max(int(tb), 128), 128)
    tf = auto_tf if tf is None else _round_up(max(int(tf), 128), 128)
    if tf >= F:
        tf = F                                    # single full-width F block
    # Auto-shrink a user tb that would blow the scoped-VMEM budget.
    while tb > 128 and tb * tf * itemsize > per_buffer_budget:
        tb = max(128, ((tb // 2) // 128) * 128)

    n_b = pl.cdiv(B, tb)
    n_f = pl.cdiv(F, tf)
    kernel = _make_linear_kernel(F, tf)
    # No jnp.pad of x: ragged last batch tile only feeds output cols >= B,
    # which the partial (1, tb) output-block write masks off.
    out_shape = jax.ShapeDtypeStruct((1, B), x.dtype)

    def _call(x_buffers):
        x_imap = lambda i, k: (i, k)
        x_spec = pl.BlockSpec((tb, tf), x_imap)
        if x_buffers > 2:
            try:
                # Deeper input pipeline keeps the HBM DMA stream saturated
                # (v7x: per-step data time shrinks vs. DMA issue latency).
                x_spec = pl.BlockSpec((tb, tf), x_imap,
                                      pipeline_mode=pl.Buffered(x_buffers))
            except TypeError:
                pass
        return pl.pallas_call(
            kernel,
            out_shape=out_shape,
            grid=(n_b, n_f),
            in_specs=[
                x_spec,
                pl.BlockSpec((1, tf), lambda i, k: (0, k)),      # weight row
                pl.BlockSpec((1, 1), lambda i, k: (0, 0),
                             memory_space=pltpu.MemorySpace.SMEM),
            ],
            out_specs=pl.BlockSpec((1, tb), lambda i, k: (0, i)),
            scratch_shapes=[pltpu.VMEM((1, tb), jnp.float32)],
            compiler_params=pltpu.CompilerParams(
                dimension_semantics=("parallel", "arbitrary"),
                vmem_limit_bytes=vmem_limit,
            ),
        )(x, w, bias_smem)

    want_buffers = 3 if (n_b * n_f >= 3 and hasattr(pl, "Buffered")) else 2
    if want_buffers > 2:
        try:
            out_row = _call(want_buffers)
        except Exception:
            out_row = _call(2)                    # conservative fallback
    else:
        out_row = _call(2)

    # (1, B) lane-dense slab -> (B, 1) column (tiny output, cheap reshape).
    return out_row.reshape(-1, 1)


# ---------------------------------------------------------------------------
# Self-test
# ---------------------------------------------------------------------------
if __name__ == "__main__":
    root = jax.random.PRNGKey(0)
    k_w1, k_b1, k_x1, k_x2, k_x3, k_x4, k_w3, k_b3, k_x5 = jax.random.split(root, 9)

    def init_linear(kw, kb, n_features):
        # nn.Linear-style weight init; bias drawn away from zero so a dropped
        # bias add cannot hide inside the numerical tolerance.
        bound = 1.0 / (n_features ** 0.5)
        w = jax.random.uniform(kw, (1, n_features), jnp.float32, -bound, bound)
        b = jax.random.uniform(kb, (1,), jnp.float32, 0.5, 1.0)
        return w, b

    def check(y, x, w, b, atol):
        y_ref = jnp.dot(x.astype(jnp.float32), w.astype(jnp.float32).T,
                        precision=jax.lax.Precision.HIGHEST) + b
        assert y.shape == (x.shape[0], 1), y.shape
        err = float(jnp.max(jnp.abs(y.astype(jnp.float32) - y_ref)))
        assert jnp.allclose(y.astype(jnp.float32), y_ref, atol=atol, rtol=1e-3), err

    F = 256
    w, b = init_linear(k_w1, k_b1, F)

    # 1) Small batch, single grid step; ragged batch tile handled by the
    #    masked partial output write — no wrapper-side padding copy of x.
    x1 = jax.random.normal(k_x1, (8, F), jnp.float32)
    y1 = jax.block_until_ready(linear_net_forward(x1, w, b))
    check(y1, x1, w, b, 5e-2)

    # 2) Multi-tile path with a ragged last tile (forced 128-row tiles ->
    #    3 grid steps; also exercises the deeper input pipeline).
    x2 = jax.random.normal(k_x2, (300, F), jnp.float32)
    y2 = jax.block_until_ready(linear_net_forward(x2, w, b, tb=128))
    check(y2, x2, w, b, 5e-2)

    # 3) Feature-split (reduction) path, ragged on both batch and feature axes.
    F3 = 200
    w3, b3 = init_linear(k_w3, k_b3, F3)
    x3 = jax.random.normal(k_x3, (160, F3), jnp.float32)
    y3 = jax.block_until_ready(linear_net_forward(x3, w3, b3, tb=128, tf=128))
    check(y3, x3, w3, b3, 5e-2)

    # 4) bf16 activations/weights (halves HBM bytes; f32 accumulation inside).
    x4 = jax.random.normal(k_x4, (64, F), jnp.float32).astype(jnp.bfloat16)
    w4 = w.astype(jnp.bfloat16)
    y4 = jax.block_until_ready(linear_net_forward(x4, w4, b))
    check(y4, x4, w4, b, 7.5e-2)

    # 5) Classic diDL shape (n_features=2): lane-sparse on TPU -> XLA fallback.
    F5 = 2
    w5, b5 = init_linear(k_w1, k_b1, F5)
    x5 = jax.random.normal(k_x5, (8, F5), jnp.float32)
    y5 = jax.block_until_ready(linear_net_forward(x5, w5, b5))
    check(y5, x5, w5, b5, 5e-2)

    print("KERNEL_OK")
</pallas_src>

<mosaic_0001>
module attributes {stable_mosaic.version = 11 : i64} {
  func.func @kernel(%arg0: i32, %arg1: i32, %arg2: memref<128x256xf32, #tpu.memory_space<vmem>>, %arg3: memref<1x256xf32, #tpu.memory_space<vmem>>, %arg4: memref<1x1xf32, #tpu.memory_space<smem>>, %arg5: memref<1x128xf32, #tpu.memory_space<vmem>>, %arg6: memref<1x128xf32, #tpu.memory_space<vmem>>) attributes {dimension_semantics = [#tpu.dimension_semantics<parallel>, #tpu.dimension_semantics<arbitrary>], iteration_bounds = array<i64: 1, 1>, scalar_prefetch = 0 : i64, scratch_operands = 1 : i64, tpu.core_type = #tpu.core_type<tc>, window_params = [{transform_indices = @transform_0, window_bounds = array<i64: 128, 256>}, {transform_indices = @transform_1, window_bounds = array<i64: 1, 256>}, {transform_indices = @transform_2, window_bounds = array<i64: 1, 1>}, {transform_indices = @transform_3, window_bounds = array<i64: 1, 128>}]} {
    %c0_i32 = arith.constant 0 : i32
    %0 = arith.cmpi eq, %arg1, %c0_i32 : i32
    %1 = arith.extui %0 : i1 to i32
    %c0_i32_0 = arith.constant 0 : i32
    %2 = arith.cmpi ne, %1, %c0_i32_0 : i32
    scf.if %2 {
      %cst_10 = arith.constant 0.000000e+00 : f32
      %12 = vector.broadcast %cst_10 : f32 to vector<1x128xf32>
      %c0_11 = arith.constant 0 : index
      %c0_12 = arith.constant 0 : index
      %13 = vector.load %arg6[%c0_11, %c0_12] : memref<1x128xf32, #tpu.memory_space<vmem>>, vector<1x128xf32>
      tpu.vector_store %arg6[%c0_11, %c0_12], %12 {strides = array<i32>} : memref<1x128xf32, #tpu.memory_space<vmem>>, vector<1x128xf32>,
    } else {
    }
    %c0 = arith.constant 0 : index
    %c0_1 = arith.constant 0 : index
    %3 = vector.load %arg2[%c0, %c0_1] : memref<128x256xf32, #tpu.memory_space<vmem>>, vector<128x256xf32>
    %c0_2 = arith.constant 0 : index
    %c0_3 = arith.constant 0 : index
    %4 = vector.load %arg3[%c0_2, %c0_3] : memref<1x256xf32, #tpu.memory_space<vmem>>, vector<1x256xf32>
    %c0_4 = arith.constant 0 : index
    %c0_5 = arith.constant 0 : index
    %5 = vector.load %arg6[%c0_4, %c0_5] : memref<1x128xf32, #tpu.memory_space<vmem>>, vector<1x128xf32>
    %cst = arith.constant dense<0.000000e+00> : vector<1x128xf32>
    %6 = tpu.matmul %4, %3, %cst {dimension_numbers = #tpu.dot_dimension_numbers<[1], [1], [0], [0], [0, 0, 1, 0], [], []>} : vector<1x256xf32>, vector<128x256xf32>, vector<1x128xf32> -> vector<1x128xf32>
    %7 = arith.addf %5, %6 : vector<1x128xf32>
    %c0_6 = arith.constant 0 : index
    %c0_7 = arith.constant 0 : index
    %8 = vector.load %arg6[%c0_6, %c0_7] : memref<1x128xf32, #tpu.memory_space<vmem>>, vector<1x128xf32>
    tpu.vector_store %arg6[%c0_6, %c0_7], %7 {strides = array<i32>} : memref<1x128xf32, #tpu.memory_space<vmem>>, vector<1x128xf32>,
    %c0_i32_8 = arith.constant 0 : i32
    %9 = arith.cmpi eq, %arg1, %c0_i32_8 : i32
    %10 = arith.extui %9 : i1 to i32
    %c0_i32_9 = arith.constant 0 : i32
    %11 = arith.cmpi ne, %10, %c0_i32_9 : i32
    scf.if %11 {
      %c0_10 = arith.constant 0 : index
      %c0_11 = arith.constant 0 : index
      %12 = vector.load %arg6[%c0_10, %c0_11] : memref<1x128xf32, #tpu.memory_space<vmem>>, vector<1x128xf32>
      %c0_12 = arith.constant 0 : index
      %c0_13 = arith.constant 0 : index
      %13 = memref.load %arg4[%c0_12, %c0_13] : memref<1x1xf32, #tpu.memory_space<smem>>
      %14 = vector.broadcast %13 : f32 to vector<1x128xf32>
      %15 = arith.addf %12, %14 : vector<1x128xf32>
      %c0_14 = arith.constant 0 : index
      %c0_15 = arith.constant 0 : index
      %16 = vector.load %arg5[%c0_14, %c0_15] : memref<1x128xf32, #tpu.memory_space<vmem>>, vector<1x128xf32>
      tpu.vector_store %arg5[%c0_14, %c0_15], %15 {strides = array<i32>} : memref<1x128xf32, #tpu.memory_space<vmem>>, vector<1x128xf32>,
    } else {
    }
    return
  }
  func.func @transform_0(%arg0: i32, %arg1: i32) -> (i32, i32) {
    %c0_i32 = arith.constant 0 : i32
    return %arg0, %arg1 : i32, i32
  }
  func.func @transform_1(%arg0: i32, %arg1: i32) -> (i32, i32) {
    %c0_i32 = arith.constant 0 : i32
    %c0_i32_0 = arith.constant 0 : i32
    return %c0_i32, %arg1 : i32, i32
  }
  func.func @transform_2(%arg0: i32, %arg1: i32) -> (i32, i32) {
    %c0_i32 = arith.constant 0 : i32
    %c0_i32_0 = arith.constant 0 : i32
    %c0_i32_1 = arith.constant 0 : i32
    return %c0_i32, %c0_i32_0 : i32, i32
  }
  func.func @transform_3(%arg0: i32, %arg1: i32) -> (i32, i32) {
    %c0_i32 = arith.constant 0 : i32
    %c0_i32_0 = arith.constant 0 : i32
    return %c0_i32, %arg0 : i32, i32
  }
}

</mosaic_0001>

<bundles_post_ra>
// kernel: tpu_custom_call.1
= control target key start
LH: loop header
LB: loop body
LE: loop exit
PB: predicated region body
PF: predicated region fallthrough
CT: control target
= control target key end

     0   :  { %9 = vsyncpa [#allocation5], 0  ;;  %s315_s0 = inlined_call_operand.hbm [shape: f32[8,256], index: 0, kind: input, shape index: {}]   ;;  %s316_s1 = inlined_call_operand.vmem [shape: f32[1,256], index: 1, kind: input, shape index: {}]   ;;  %s317_s2 = inlined_call_operand.<no memory space> [shape: f32[1,1], index: 2, kind: input, shape index: {}]   ;;  %s318_s3 = inlined_call_operand.hbm [shape: f32[1,8], index: 3, kind: output, shape index: {}]  }
   0x1   :  { %10 = vsyncpa [#allocation6], 0 }
   0x2   :  { %15 = vsyncadd [#allocation5], 3840  ;;  %s260_s12 = smov [#allocation4]   ;;  %s212_s16 = scalar_lea.hbm %s315_s0, 256 }
   0x3   :  { %s16_s13 = sshll.u32 %s260_s12, 4  ;;  %p213_p0 = scmp.ne.s32.totalorder %s315_s0, %s212_s16  ;;  %s17_s13 = int_to_ptr.vmem [resolvable:$true] %s16_s13 }
   0x4   :  { %p216_p1 = scmp.lt.u32.totalorder %s212_s16, %s315_s0 }
   0x6   :  { %p218_p2 = pnand %p216_p1, %p213_p0 }
   0x8   :  { %221 = shalt.err (!%p218_p2)
}
   0x9   :  { %s222_s21 = scalar_lea.vmem %s17_s13, 256  ;;  %s226_s22 = scalar_lea.vmem %s17_s13, 4096 }
   0xa   :  { %p223_p3 = scmp.ne.s32.totalorder %s17_s13, %s222_s21  ;;  %p227_p4 = scmp.lt.s32.totalorder %s17_s13, %s17_s13 }
   0xb   :  { %p228_p5 = scmp.lt.s32.totalorder %s226_s22, %s222_s21 }
   0xd   :  { %p229_p6 = por %p228_p5, %p227_p4 }
   0xf   :  { %p230_p7 = pnand %p229_p6, %p223_p3 }
  0x11   :  { %233 = shalt.err (!%p230_p7)
}
  0x12   :  { %s261_s23 = smov 256   ;;  %s262_s24 = smov 16  }
  0x13   :  { %22 = dma.hbm_to_vmem [thread:$0]  %s315_s0, 256, %s17_s13, [#allocation5], %s261_s23, %s261_s23, %s262_s24  }
  0x14   :  { %256 = dma.done.wait [#allocation5], 4096  }
  0x15   :  { %257 = vsyncadd [#allocation5], 4294963200  ;;  %v263_v0 = vmov 0.0   ;;  %v70_v1 = vlaneseq  ;;  %v36_v2 = vld [vmem:[#allocation4 + $0x8] sm:$0xff]  ;;  %v38_v3 = vld [vmem:[#allocation4 + $0x18] sm:$0xff]  ;;  %v157_v60 = vstv %s317_s2  ;;  %s264_s29 = smov [#allocation7]  }
  0x16   :  { %34 = vst [vmem:[#allocation2] sm:$0x1] %v263_v0  ;;  %v35_v4 = vld [vmem:[#allocation4] sm:$0xff]  ;;  %v175_v5 = vpack.c.bf16 %v38_v3, %v36_v2  ;;  %v37_v6 = vld [vmem:[#allocation4 + $0x10] sm:$0xff]  ;;  %v40_v7 = vld [vmem:[#allocation4 + $0x28] sm:$0xff]  ;;  %s166_s30 = sshll.u32 %s264_s29, 4  ;;  %s167_s30 = int_to_ptr.vmem [resolvable:$true] %s166_s30 }
  0x17   :  { %v42_v8 = vld [vmem:[#allocation4 + $0x38] sm:$0xff]  ;;  %v177_v9 = vpack.c.bf16 %v37_v6, %v35_v4  ;;  %v71_v11 = vshrl.u32 %v70_v1, 7  ;;  %v39_v12 = vld [vmem:[#allocation4 + $0x20] sm:$0xff]  ;;  %v41_v13 = vld [vmem:[#allocation4 + $0x30] sm:$0xff]  ;;  %s234_s4 = scalar_lea.vmem %s167_s30, 16  ;;  %s238_s5 = scalar_lea.vmem %s167_s30, 32 }
  0x18   :  { %v179_v10 = vpack.c.bf16 %v42_v8, %v40_v7  ;;  %176 = vmatprep.subr.bf16.mxu0 %v175_v5  ;;  %v44_v14 = vld [vmem:[#allocation4 + $0x48] sm:$0xff]  ;;  %v46_v15 = vld [vmem:[#allocation4 + $0x58] sm:$0xff]  ;;  %v181_v17 = vpack.c.bf16 %v41_v13, %v39_v12  ;;  %v43_v21 = vld [vmem:[#allocation4 + $0x40] sm:$0xff]  ;;  %p235_p8 = scmp.ne.s32.totalorder %s167_s30, %s234_s4  ;;  %p239_p9 = scmp.lt.s32.totalorder %s167_s30, %s167_s30 }
  0x19   :  { %178 = vmatpush1.bf16.xpose.msra.mxu0 %v177_v9  ;;  %v76_v16 = vsub.s32 1, %v71_v11  ;;  %v183_v18 = vpack.c.bf16 %v46_v15, %v44_v14  ;;  %v67_v19 = vld [vmem:[%s316_s1] sm:$0x3]  ;;  %v45_v22 = vld [vmem:[#allocation4 + $0x50] sm:$0xff]  ;;  %v48_v23 = vld [vmem:[#allocation4 + $0x68] sm:$0xff]  ;;  %v72_v54 = vsub.s32 0, %v71_v11  ;;  %p240_p10 = scmp.lt.s32.totalorder %s238_s5, %s234_s4 }
  0x1a   :  { %180 = vmatprep.subr.bf16.mxu0 %v179_v10  ;;  %v50_v24 = vld [vmem:[#allocation4 + $0x78] sm:$0xff]  ;;  %v185_v25 = vpack.c.bf16 %v45_v22, %v43_v21  ;;  %v47_v27 = vld [vmem:[#allocation4 + $0x60] sm:$0xff]  ;;  %v49_v28 = vld [vmem:[#allocation4 + $0x70] sm:$0xff] }
  0x1b   :  { %v77_v20 = vrot.slane %v67_v19, %v76_v16  ;;  %v187_v26 = vpack.c.bf16 %v50_v24, %v48_v23  ;;  %v52_v29 = vld [vmem:[#allocation4 + $0x88] sm:$0xff]  ;;  %v54_v30 = vld [vmem:[#allocation4 + $0x98] sm:$0xff]  ;;  %v189_v31 = vpack.c.bf16 %v49_v28, %v47_v27  ;;  %v51_v33 = vld [vmem:[#allocation4 + $0x80] sm:$0xff]  ;;  %v73_v55 = vrot.slane %v67_v19, %v72_v54  ;;  %p241_p11 = por %p240_p10, %p239_p9 }
  0x1c   :  { %v191_v32 = vpack.c.bf16 %v54_v30, %v52_v29  ;;  %v53_v34 = vld [vmem:[#allocation4 + $0x90] sm:$0xff]  ;;  %v56_v35 = vld [vmem:[#allocation4 + $0xa8] sm:$0xff]  ;;  %v58_v36 = vld [vmem:[#allocation4 + $0xb8] sm:$0xff] }
  0x1d   :  { %144 = vmatprep.mubr.f32.mxu0 %v77_v20  ;;  %v193_v37 = vpack.c.bf16 %v53_v34, %v51_v33  ;;  %v195_v38 = vpack.c.bf16 %v58_v36, %v56_v35  ;;  %v55_v39 = vld [vmem:[#allocation4 + $0xa0] sm:$0xff]  ;;  %v57_v40 = vld [vmem:[#allocation4 + $0xb0] sm:$0xff]  ;;  %v60_v41 = vld [vmem:[#allocation4 + $0xc8] sm:$0xff]  ;;  %p242_p12 = pnand %p241_p11, %p235_p8 }
  0x1e   :  { %v62_v42 = vld [vmem:[#allocation4 + $0xd8] sm:$0xff]  ;;  %v197_v43 = vpack.c.bf16 %v57_v40, %v55_v39  ;;  %v59_v45 = vld [vmem:[#allocation4 + $0xc0] sm:$0xff]  ;;  %v61_v46 = vld [vmem:[#allocation4 + $0xd0] sm:$0xff] }
  0x1f   :  { %v199_v44 = vpack.c.bf16 %v62_v42, %v60_v41  ;;  %v64_v47 = vld [vmem:[#allocation4 + $0xe8] sm:$0xff]  ;;  %v66_v48 = vld [vmem:[#allocation4 + $0xf8] sm:$0xff]  ;;  %v201_v49 = vpack.c.bf16 %v61_v46, %v59_v45  ;;  %v63_v51 = vld [vmem:[#allocation4 + $0xe0] sm:$0xff] }
  0x20   :  { %v203_v50 = vpack.c.bf16 %v66_v48, %v64_v47  ;;  %v65_v52 = vld [vmem:[#allocation4 + $0xf0] sm:$0xff]  ;;  %v68_v56 = vld [vmem:[#allocation2] sm:$0x1] }
  0x21   :  { %182 = vmatpush1.bf16.xpose.msra.mxu0 %v181_v17  ;;  %v205_v53 = vpack.c.bf16 %v65_v52, %v63_v51 }
  0x22   :  { %184 = vmatprep.subr.bf16.mxu0 %v183_v18 }
  0x29   :  { %186 = vmatpush1.bf16.xpose.msra.mxu0 %v185_v25 }
  0x2a   :  { %188 = vmatprep.subr.bf16.mxu0 %v187_v26 }
  0x31   :  { %190 = vmatpush1.bf16.xpose.msra.mxu0 %v189_v31 }
  0x32   :  { %192 = vmatprep.subr.bf16.mxu0 %v191_v32 }
  0x39   :  { %194 = vmatpush1.bf16.xpose.msra.mxu0 %v193_v37 }
  0x3a   :  { %196 = vmatprep.subr.bf16.mxu0 %v195_v38 }
  0x41   :  { %198 = vmatpush1.bf16.xpose.msra.mxu0 %v197_v43 }
  0x42   :  { %200 = vmatprep.subr.bf16.mxu0 %v199_v44 }
  0x49   :  { %202 = vmatpush1.bf16.xpose.msra.mxu0 %v201_v49 }
  0x4a   :  { %204 = vmatprep.subr.bf16.mxu0 %v203_v50 }
  0x51   :  { %206 = vmatpush1.bf16.xpose.msra.mxu0 %v205_v53 }
  0x58   :  { %145 = vmatmul.mubr.f32.vlgmr.msra.gmra.mrb[0].mxu0 %v73_v55 }
 0x12b   :  { %v146_v57 = vpop.f32.mrb[0].mxu0 }
 0x12c   :  { %v150_v58 = vadd.f32 %v146_v57, %v68_v56  ;;  %v148_v59 = vpop.f32.mrb[1].mxu0 }
 0x12e   :  { %151 = vst [vmem:[#allocation2] sm:$0x1] %v150_v58 }
 0x135   :  { %v155_v61 = vld [vmem:[#allocation2] sm:$0x1] }
 0x136   :  { %v158_v62 = vadd.f32 %v157_v60, %v155_v61 }
 0x138   :  { %159 = vst [vmem:[#allocation7] sm:$0x1] %v158_v62 }
 0x139   :  { %245 = shalt.err (!%p242_p12)
}
 0x13a   :  { %s246_s8 = scalar_lea.hbm %s318_s3, 16 }
 0x13b   :  { %p247_p13 = scmp.ne.s32.totalorder %s318_s3, %s246_s8  ;;  %p250_p0 = scmp.lt.u32.totalorder %s246_s8, %s318_s3 }
 0x13d   :  { %p252_p1 = pnand %p250_p0, %p247_p13 }
 0x13f   :  { %255 = shalt.err (!%p252_p1)
}
 0x140   :  { %169 = dma.vmem_to_hbm [thread:$0]  %s167_s30, 16, %s318_s3, [#allocation6]  }
 0x141   :  { %258 = dma.done.wait [#allocation6], 16  }
 0x142   :  { %259 = vsyncadd [#allocation6], 4294967280 }
 0x143   :  { %173 = vsyncpa [#allocation5], 1 }
 0x144   :  { %174 = vsyncpa [#allocation6], 1 }

</bundles_post_ra>
